<compile_context>
chip_gen: v6e
topology: v6e:2x2x1
jax: 0.10.0
libtpu: 0.0.40
codegen_flags: <defaults>
</compile_context>

<pallas_src>
import functools

import jax
import jax.numpy as jnp
from jax.experimental import pallas as pl
from jax.experimental.pallas import tpu as pltpu

HIDDEN = 256


def _round_up(x, m):
    return ((x + m - 1) // m) * m


def top_decoder_kernel(z_ref,
                       w1_ref, b1_ref,
                       w2_ref, b2_ref,
                       w3_ref, b3_ref,
                       w4_ref, b4_ref,
                       o_ref):
    def hidden_layer(x_bf16, w_ref, b_ref):
        # bf16 operands, f32 accumulation on the MXU.
        acc = jnp.dot(x_bf16, w_ref[...], preferred_element_type=jnp.float32)
        # Epilogue dtype follows the bias dtype: bf16 on v6e/v7x (bf16 VPU),
        # f32 on v5e (no bf16 VALU). Result is cast to bf16 for the next dot
        # (no-op when the epilogue is already bf16).
        h = jnp.maximum(acc.astype(b_ref.dtype) + b_ref[...], 0.0)
        return h.astype(jnp.bfloat16)

    h = hidden_layer(z_ref[...], w1_ref, b1_ref)       # fc1 + ReLU
    h = hidden_layer(h, w2_ref, b2_ref)                # fc2 + ReLU
    h = hidden_layer(h, w3_ref, b3_ref)                # fc3 + ReLU
    # fc4 (no activation): f32 bias-add, f32 output (matches nn.Linear output).
    acc = jnp.dot(h, w4_ref[...], preferred_element_type=jnp.float32)
    o_ref[...] = (acc + b4_ref[...]).astype(o_ref.dtype)


@functools.partial(jax.jit, static_argnames=("tb", "bf16_epilogue"))
def _top_decoder_impl(z, params, *, tb, bf16_epilogue):
    B, latent_dim = z.shape
    out_dim = params["w4"].shape[1]
    ep_dtype = jnp.bfloat16 if bf16_epilogue else jnp.float32

    # ---- lane-dense output: pad final layer to a multiple of 128 lanes ----
    out_pad = _round_up(max(out_dim, 128), 128)
    w4 = params["w4"]
    b4 = params["b4"].astype(jnp.float32)
    if out_pad != out_dim:
        w4 = jnp.pad(w4, ((0, 0), (0, out_pad - out_dim)))
        b4 = jnp.pad(b4, ((0, 0), (0, out_pad - out_dim)))

    # Hidden-layer biases in the epilogue dtype (hoisted cast, once per call).
    b1 = params["b1"].astype(ep_dtype)
    b2 = params["b2"].astype(ep_dtype)
    b3 = params["b3"].astype(ep_dtype)

    # Activations enter the kernel already in bf16 (halves z DMA bytes).
    z = z.astype(jnp.bfloat16)

    # ---- batch tiling ----
    if B <= 256:
        # Small batch: a single grid step, minimal padding.
        tb_eff = max(8, _round_up(B, 8))
    else:
        # Large batch: 256-multiple M tile (fills the 2x256 MXU on v6e/v7x),
        # at least 2 grid steps so the "parallel" axis can split across the
        # two v7x TensorCores.
        tb_eff = min(tb, max(256, _round_up(pl.cdiv(B, 2), 256)))
    b_pad = _round_up(B, tb_eff)
    if b_pad != B:
        z = jnp.pad(z, ((0, b_pad - B), (0, 0)))
    grid = (b_pad // tb_eff,)

    # z / out tiles march over the batch; weights & biases use a constant
    # index_map so they stay VMEM-resident across grid steps (no re-DMA).
    tile = lambda i: (i, 0)      # noqa: E731
    const = lambda i: (0, 0)     # noqa: E731
    in_specs = [
        pl.BlockSpec((tb_eff, latent_dim), tile),        # z (bf16)
        pl.BlockSpec((latent_dim, HIDDEN), const),       # w1 (bf16)
        pl.BlockSpec((1, HIDDEN), const),                # b1
        pl.BlockSpec((HIDDEN, HIDDEN), const),           # w2 (bf16)
        pl.BlockSpec((1, HIDDEN), const),                # b2
        pl.BlockSpec((HIDDEN, HIDDEN), const),           # w3 (bf16)
        pl.BlockSpec((1, HIDDEN), const),                # b3
        pl.BlockSpec((HIDDEN, out_pad), const),          # w4 (bf16, lane-padded)
        pl.BlockSpec((1, out_pad), const),               # b4 (f32, lane-padded)
    ]
    out_specs = pl.BlockSpec((tb_eff, out_pad), tile)

    compiler_kwargs = dict(dimension_semantics=("parallel",))  # megacore on v7x
    if tb_eff >= 512:
        # Large tiles: raise scoped VMEM above v5e's 16 MiB default; 32 MiB is
        # still safely within v7x's 64 MiB physical VMEM per TC.
        compiler_kwargs["vmem_limit_bytes"] = 32 * 1024 * 1024

    out = pl.pallas_call(
        top_decoder_kernel,
        out_shape=jax.ShapeDtypeStruct((b_pad, out_pad), jnp.float32),
        grid=grid,
        in_specs=in_specs,
        out_specs=out_specs,
        compiler_params=pltpu.CompilerParams(**compiler_kwargs),
    )(z, params["w1"], b1, params["w2"], b2, params["w3"], b3, w4, b4)

    # Slice stays inside the jit -> fuses with the consumer, no extra HBM copy.
    return out[:B, :out_dim]


def top_decoder(z, params, *, tb=512, bf16_epilogue=None):
    """z: (B, latent_dim) float32.
    params: w1..w4 bf16 with shape (in_dim, out_dim) (PyTorch weight.T),
            b1..b4 f32 with shape (1, out_dim)."""
    if bf16_epilogue is None:
        kind = jax.devices()[0].device_kind.lower()
        # bf16 VPU only on v6e / v7x; keep f32 elementwise path elsewhere (v5e).
        bf16_epilogue = ("v6" in kind) or ("v7" in kind)
    return _top_decoder_impl(z, params, tb=int(tb),
                             bf16_epilogue=bool(bf16_epilogue))


def init_params(key, latent_dim, out_dim, hidden=HIDDEN):
    """Deterministic synthetic parameters (PyTorch-style fan-in uniform).
    Weights stored bf16 (in_dim, out_dim); biases f32 (1, out_dim)."""
    dims = [(latent_dim, hidden), (hidden, hidden), (hidden, hidden),
            (hidden, out_dim)]
    params = {}
    for i, (fan_in, fan_out) in enumerate(dims, start=1):
        key, kw, kb = jax.random.split(key, 3)
        bound = 1.0 / (fan_in ** 0.5)
        params[f"w{i}"] = jax.random.uniform(
            kw, (fan_in, fan_out), jnp.float32, -bound, bound).astype(jnp.bfloat16)
        params[f"b{i}"] = jax.random.uniform(
            kb, (1, fan_out), jnp.float32, -bound, bound)
    return params


def top_decoder_ref(z, params, *, bf16_epilogue=False):
    """Pure-JAX reference mirroring the kernel math exactly
    (bf16 dots, f32 accumulation, epilogue in the same dtype as the kernel)."""
    ep = jnp.bfloat16 if bf16_epilogue else jnp.float32

    def hidden_layer(h, w, b):
        acc = jnp.dot(h.astype(jnp.bfloat16), w,
                      preferred_element_type=jnp.float32)
        return jnp.maximum(acc.astype(ep) + b.astype(ep), 0.0).astype(jnp.bfloat16)

    h = hidden_layer(z, params["w1"], params["b1"])
    h = hidden_layer(h, params["w2"], params["b2"])
    h = hidden_layer(h, params["w3"], params["b3"])
    acc = jnp.dot(h, params["w4"], preferred_element_type=jnp.float32)
    return acc + params["b4"]


if __name__ == "__main__":
    key = jax.random.PRNGKey(0)
    batch, latent_dim, out_dim = 2, 8, 32

    kz, kp = jax.random.split(key)
    z = jax.random.normal(kz, (batch, latent_dim), jnp.float32)
    params = init_params(kp, latent_dim, out_dim)

    kind = jax.devices()[0].device_kind.lower()
    bf16_ep = ("v6" in kind) or ("v7" in kind)

    out = top_decoder(z, params, bf16_epilogue=bf16_ep)
    out = jax.block_until_ready(out)

    ref = top_decoder_ref(z, params, bf16_epilogue=bf16_ep)
    assert out.shape == (batch, out_dim)
    assert jnp.allclose(out, ref, atol=1e-2, rtol=1e-2), (
        float(jnp.max(jnp.abs(out - ref))))

    print("KERNEL_OK")
</pallas_src>

<mosaic_0001>
module attributes {stable_mosaic.version = 11 : i64} {
  func.func @top_decoder_kernel(%arg0: i32, %arg1: memref<8x8xbf16, #tpu.memory_space<vmem>>, %arg2: memref<8x256xbf16, #tpu.memory_space<vmem>>, %arg3: memref<1x256xf32, #tpu.memory_space<vmem>>, %arg4: memref<256x256xbf16, #tpu.memory_space<vmem>>, %arg5: memref<1x256xf32, #tpu.memory_space<vmem>>, %arg6: memref<256x256xbf16, #tpu.memory_space<vmem>>, %arg7: memref<1x256xf32, #tpu.memory_space<vmem>>, %arg8: memref<256x128xbf16, #tpu.memory_space<vmem>>, %arg9: memref<1x128xf32, #tpu.memory_space<vmem>>, %arg10: memref<8x128xf32, #tpu.memory_space<vmem>>) attributes {dimension_semantics = [#tpu.dimension_semantics<parallel>], iteration_bounds = array<i64: 1>, scalar_prefetch = 0 : i64, scratch_operands = 0 : i64, tpu.core_type = #tpu.core_type<tc>, window_params = [{transform_indices = @transform_0, window_bounds = array<i64: 8, 8>}, {pipeline_mode = #tpu.pipeline_mode<synchronous>, transform_indices = @transform_1, window_bounds = array<i64: 8, 256>}, {pipeline_mode = #tpu.pipeline_mode<synchronous>, transform_indices = @transform_2, window_bounds = array<i64: 1, 256>}, {pipeline_mode = #tpu.pipeline_mode<synchronous>, transform_indices = @transform_3, window_bounds = array<i64: 256, 256>}, {pipeline_mode = #tpu.pipeline_mode<synchronous>, transform_indices = @transform_4, window_bounds = array<i64: 1, 256>}, {pipeline_mode = #tpu.pipeline_mode<synchronous>, transform_indices = @transform_5, window_bounds = array<i64: 256, 256>}, {pipeline_mode = #tpu.pipeline_mode<synchronous>, transform_indices = @transform_6, window_bounds = array<i64: 1, 256>}, {pipeline_mode = #tpu.pipeline_mode<synchronous>, transform_indices = @transform_7, window_bounds = array<i64: 256, 128>}, {pipeline_mode = #tpu.pipeline_mode<synchronous>, transform_indices = @transform_8, window_bounds = array<i64: 1, 128>}, {transform_indices = @transform_9, window_bounds = array<i64: 8, 128>}]} {
    %c0 = arith.constant 0 : index
    %c0_0 = arith.constant 0 : index
    %0 = vector.load %arg1[%c0, %c0_0] : memref<8x8xbf16, #tpu.memory_space<vmem>>, vector<8x8xbf16>
    %c0_1 = arith.constant 0 : index
    %c0_2 = arith.constant 0 : index
    %1 = vector.load %arg2[%c0_1, %c0_2] : memref<8x256xbf16, #tpu.memory_space<vmem>>, vector<8x256xbf16>
    %cst = arith.constant dense<0.000000e+00> : vector<8x256xf32>
    %2 = tpu.matmul %0, %1, %cst {dimension_numbers = #tpu.dot_dimension_numbers<[1], [0], [0], [1], [0, 0, 1, 1], [], []>} : vector<8x8xbf16>, vector<8x256xbf16>, vector<8x256xf32> -> vector<8x256xf32>
    %c0_3 = arith.constant 0 : index
    %c0_4 = arith.constant 0 : index
    %3 = vector.load %arg3[%c0_3, %c0_4] : memref<1x256xf32, #tpu.memory_space<vmem>>, vector<1x256xf32>
    %4 = vector.broadcast %3 : vector<1x256xf32> to vector<8x256xf32>
    %5 = arith.addf %2, %4 : vector<8x256xf32>
    %cst_5 = arith.constant 0.000000e+00 : f32
    %6 = vector.broadcast %cst_5 : f32 to vector<8x256xf32>
    %7 = arith.maximumf %5, %6 : vector<8x256xf32>
    %8 = arith.truncf %7 : vector<8x256xf32> to vector<8x256xbf16>
    %c0_6 = arith.constant 0 : index
    %c0_7 = arith.constant 0 : index
    %9 = vector.load %arg4[%c0_6, %c0_7] : memref<256x256xbf16, #tpu.memory_space<vmem>>, vector<256x256xbf16>
    %cst_8 = arith.constant dense<0.000000e+00> : vector<8x256xf32>
    %10 = tpu.matmul %8, %9, %cst_8 {dimension_numbers = #tpu.dot_dimension_numbers<[1], [0], [0], [1], [0, 0, 1, 1], [], []>} : vector<8x256xbf16>, vector<256x256xbf16>, vector<8x256xf32> -> vector<8x256xf32>
    %c0_9 = arith.constant 0 : index
    %c0_10 = arith.constant 0 : index
    %11 = vector.load %arg5[%c0_9, %c0_10] : memref<1x256xf32, #tpu.memory_space<vmem>>, vector<1x256xf32>
    %12 = vector.broadcast %11 : vector<1x256xf32> to vector<8x256xf32>
    %13 = arith.addf %10, %12 : vector<8x256xf32>
    %cst_11 = arith.constant 0.000000e+00 : f32
    %14 = vector.broadcast %cst_11 : f32 to vector<8x256xf32>
    %15 = arith.maximumf %13, %14 : vector<8x256xf32>
    %16 = arith.truncf %15 : vector<8x256xf32> to vector<8x256xbf16>
    %c0_12 = arith.constant 0 : index
    %c0_13 = arith.constant 0 : index
    %17 = vector.load %arg6[%c0_12, %c0_13] : memref<256x256xbf16, #tpu.memory_space<vmem>>, vector<256x256xbf16>
    %cst_14 = arith.constant dense<0.000000e+00> : vector<8x256xf32>
    %18 = tpu.matmul %16, %17, %cst_14 {dimension_numbers = #tpu.dot_dimension_numbers<[1], [0], [0], [1], [0, 0, 1, 1], [], []>} : vector<8x256xbf16>, vector<256x256xbf16>, vector<8x256xf32> -> vector<8x256xf32>
    %c0_15 = arith.constant 0 : index
    %c0_16 = arith.constant 0 : index
    %19 = vector.load %arg7[%c0_15, %c0_16] : memref<1x256xf32, #tpu.memory_space<vmem>>, vector<1x256xf32>
    %20 = vector.broadcast %19 : vector<1x256xf32> to vector<8x256xf32>
    %21 = arith.addf %18, %20 : vector<8x256xf32>
    %cst_17 = arith.constant 0.000000e+00 : f32
    %22 = vector.broadcast %cst_17 : f32 to vector<8x256xf32>
    %23 = arith.maximumf %21, %22 : vector<8x256xf32>
    %24 = arith.truncf %23 : vector<8x256xf32> to vector<8x256xbf16>
    %c0_18 = arith.constant 0 : index
    %c0_19 = arith.constant 0 : index
    %25 = vector.load %arg8[%c0_18, %c0_19] : memref<256x128xbf16, #tpu.memory_space<vmem>>, vector<256x128xbf16>
    %cst_20 = arith.constant dense<0.000000e+00> : vector<8x128xf32>
    %26 = tpu.matmul %24, %25, %cst_20 {dimension_numbers = #tpu.dot_dimension_numbers<[1], [0], [0], [1], [0, 0, 1, 1], [], []>} : vector<8x256xbf16>, vector<256x128xbf16>, vector<8x128xf32> -> vector<8x128xf32>
    %c0_21 = arith.constant 0 : index
    %c0_22 = arith.constant 0 : index
    %27 = vector.load %arg9[%c0_21, %c0_22] : memref<1x128xf32, #tpu.memory_space<vmem>>, vector<1x128xf32>
    %28 = vector.broadcast %27 : vector<1x128xf32> to vector<8x128xf32>
    %29 = arith.addf %26, %28 : vector<8x128xf32>
    %c0_23 = arith.constant 0 : index
    %c0_24 = arith.constant 0 : index
    %30 = vector.load %arg10[%c0_23, %c0_24] : memref<8x128xf32, #tpu.memory_space<vmem>>, vector<8x128xf32>
    tpu.vector_store %arg10[%c0_23, %c0_24], %29 {strides = array<i32>} : memref<8x128xf32, #tpu.memory_space<vmem>>, vector<8x128xf32>,
    return
  }
  func.func @transform_0(%arg0: i32) -> (i32, i32) {
    %c0_i32 = arith.constant 0 : i32
    %c0_i32_0 = arith.constant 0 : i32
    return %arg0, %c0_i32 : i32, i32
  }
  func.func @transform_1(%arg0: i32) -> (i32, i32) {
    %c0_i32 = arith.constant 0 : i32
    %c0_i32_0 = arith.constant 0 : i32
    %c0_i32_1 = arith.constant 0 : i32
    return %c0_i32, %c0_i32_0 : i32, i32
  }
  func.func @transform_2(%arg0: i32) -> (i32, i32) {
    %c0_i32 = arith.constant 0 : i32
    %c0_i32_0 = arith.constant 0 : i32
    %c0_i32_1 = arith.constant 0 : i32
    return %c0_i32, %c0_i32_0 : i32, i32
  }
  func.func @transform_3(%arg0: i32) -> (i32, i32) {
    %c0_i32 = arith.constant 0 : i32
    %c0_i32_0 = arith.constant 0 : i32
    %c0_i32_1 = arith.constant 0 : i32
    return %c0_i32, %c0_i32_0 : i32, i32
  }
  func.func @transform_4(%arg0: i32) -> (i32, i32) {
    %c0_i32 = arith.constant 0 : i32
    %c0_i32_0 = arith.constant 0 : i32
    %c0_i32_1 = arith.constant 0 : i32
    return %c0_i32, %c0_i32_0 : i32, i32
  }
  func.func @transform_5(%arg0: i32) -> (i32, i32) {
    %c0_i32 = arith.constant 0 : i32
    %c0_i32_0 = arith.constant 0 : i32
    %c0_i32_1 = arith.constant 0 : i32
    return %c0_i32, %c0_i32_0 : i32, i32
  }
  func.func @transform_6(%arg0: i32) -> (i32, i32) {
    %c0_i32 = arith.constant 0 : i32
    %c0_i32_0 = arith.constant 0 : i32
    %c0_i32_1 = arith.constant 0 : i32
    return %c0_i32, %c0_i32_0 : i32, i32
  }
  func.func @transform_7(%arg0: i32) -> (i32, i32) {
    %c0_i32 = arith.constant 0 : i32
    %c0_i32_0 = arith.constant 0 : i32
    %c0_i32_1 = arith.constant 0 : i32
    return %c0_i32, %c0_i32_0 : i32, i32
  }
  func.func @transform_8(%arg0: i32) -> (i32, i32) {
    %c0_i32 = arith.constant 0 : i32
    %c0_i32_0 = arith.constant 0 : i32
    %c0_i32_1 = arith.constant 0 : i32
    return %c0_i32, %c0_i32_0 : i32, i32
  }
  func.func @transform_9(%arg0: i32) -> (i32, i32) {
    %c0_i32 = arith.constant 0 : i32
    %c0_i32_0 = arith.constant 0 : i32
    return %arg0, %c0_i32 : i32, i32
  }
}

</mosaic_0001>

<bundles_post_ra>
// kernel: _top_decoder_impl.1
= control target key start
LH: loop header
LB: loop body
LE: loop exit
PB: predicated region body
PF: predicated region fallthrough
CT: control target
= control target key end

     0   :  { %14 = vsyncpa [#allocation3], 0  ;;  %s1048_s30 = smov [#allocation2]   ;;  %s1280_s0 = inlined_call_operand.vmem [shape: bf16[8,8], index: 0, kind: input, shape index: {}]   ;;  %s1281_s1 = inlined_call_operand.vmem [shape: bf16[8,256], index: 1, kind: input, shape index: {}]   ;;  %s1282_s2 = inlined_call_operand.vmem [shape: f32[1,256], index: 2, kind: input, shape index: {}]   ;;  %s1283_s3 = inlined_call_operand.vmem [shape: bf16[256,256], index: 3, kind: input, shape index: {}]   ;;  %s1284_s4 = inlined_call_operand.vmem [shape: f32[1,256], index: 4, kind: input, shape index: {}]   ;;  %s1285_s5 = inlined_call_operand.hbm [shape: bf16[256,256], index: 5, kind: input, shape index: {}]   ;;  %s1286_s6 = inlined_call_operand.vmem [shape: f32[1,256], index: 6, kind: input, shape index: {}]   ;;  %s1287_s7 = inlined_call_operand.vmem [shape: bf16[256,128], index: 7, kind: input, shape index: {}]   ;;  %s1288_s8 = inlined_call_operand.vmem [shape: f32[1,128], index: 8, kind: input, shape index: {}]   ;;  %s1289_s9 = inlined_call_operand.vmem [shape: f32[8,128], index: 9, kind: output, shape index: {}]  }
   0x1   :  { %s30_s10 = sshll.u32 %s1048_s30, 4  ;;  %s31_s10 = int_to_ptr.vmem [resolvable:$true] %s30_s10 }
   0x2   :  { %s1034_s11 = scalar_lea.vmem %s31_s10, 4096  ;;  %p1039_p1 = scmp.lt.s32.totalorder %s31_s10, %s31_s10 }
   0x3   :  { %p1035_p0 = scmp.ne.s32.totalorder %s31_s10, %s1034_s11  ;;  %p1040_p2 = scmp.lt.s32.totalorder %s1034_s11, %s1034_s11 }
   0x5   :  { %p1041_p3 = por %p1040_p2, %p1039_p1 }
   0x7   :  { %p1042_p4 = pnand %p1041_p3, %p1035_p0 }
   0x9   :  { %1045 = shalt.err (!%p1042_p4)
}
   0xa   :  { %s1049_s12 = smov 128   ;;  %s1050_s13 = smov 8  }
   0xb   :  { %36 = dma.hbm_to_vmem [thread:$0]  %s1285_s5, 4096, %s31_s10, [#allocation3], %s1049_s12, %s1049_s12, %s1050_s13  }
   0xc   :  { %1046 = dma.done.wait [#allocation3], 4096  }
   0xd   :  { %1047 = vsyncadd [#allocation3], 4294963200  ;;  %v1051_v0 = vmov 0   ;;  %v48_v1 = vld [vmem:[%s1281_s1] sm:$0xff]  ;;  %vm70_vm0 = vcmask 1043456   ;;  %vm66_vm1 = vcmask 64512  }
   0xe   :  { %109 = vmatprep.mubr.bf16.mxu0 %v1051_v0  ;;  %v802_v2 = vcombine.high %v48_v1, %v48_v1  ;;  %v801_v3 = vcombine.low %v48_v1, %v48_v1  ;;  %v914_v4 = vld [vmem:[%s1283_s3 + $0x74] ss:$8 sps:$4 sm:$0xff]   ;;  %v916_v5 = vld [vmem:[%s1283_s3 + $0x70] ss:$8 sps:$4 sm:$0xff]   ;;  %v917_v6 = vld [vmem:[%s1283_s3 + $0x64] ss:$8 sps:$4 sm:$0xff]  }
   0xf   :  { %326 = vmatprep.subr.bf16.mxu1 %v914_v4  ;;  %v47_v8 = vld [vmem:[%s1280_s0] sm:$0xf]  ;;  %v920_v10 = vld [vmem:[%s1283_s3 + $0x54] ss:$8 sps:$4 sm:$0xff]   ;;  %v922_v11 = vld [vmem:[%s1283_s3 + $0x50] ss:$8 sps:$4 sm:$0xff]  }
  0x10   :  { %803 = vmatprep.subr.msk.bf16.mxu0 %vm70_vm0, %v802_v2  ;;  %v72_v7 = vsel %vm70_vm0, %v801_v3, 0  ;;  %327 = vmatpush1.bf16.msra.mxu1 %v916_v5  ;;  %v919_v9 = vld [vmem:[%s1283_s3 + $0x60] ss:$8 sps:$4 sm:$0xff]   ;;  %v923_v12 = vld [vmem:[%s1283_s3 + $0x44] ss:$8 sps:$4 sm:$0xff]   ;;  %v51_v2 = vlaneseq }
  0x11   :  { %92 = vmatpush1.bf16.msra.mxu0 %v72_v7  ;;  %328 = vmatprep.subr.bf16.mxu1 %v917_v6  ;;  %v925_v13 = vld [vmem:[%s1283_s3 + $0x40] ss:$8 sps:$4 sm:$0xff]   ;;  %v926_v14 = vld [vmem:[%s1283_s3 + $0x34] ss:$8 sps:$4 sm:$0xff]   ;;  %v928_v15 = vld [vmem:[%s1283_s3 + $0x30] ss:$8 sps:$4 sm:$0xff]  }
  0x12   :  { %v929_v16 = vld [vmem:[%s1283_s3 + $0x24] ss:$8 sps:$4 sm:$0xff]   ;;  %v931_v17 = vld [vmem:[%s1283_s3 + $0x20] ss:$8 sps:$4 sm:$0xff]   ;;  %v932_v18 = vld [vmem:[%s1283_s3 + $0x14] ss:$8 sps:$4 sm:$0xff]  }
  0x13   :  { %v934_v19 = vld [vmem:[%s1283_s3 + $0x10] ss:$8 sps:$4 sm:$0xff]   ;;  %v935_v20 = vld [vmem:[%s1283_s3 + $0x4] ss:$8 sps:$4 sm:$0xff]   ;;  %v937_v21 = vld [vmem:[%s1283_s3] ss:$8 sps:$4 sm:$0xff]  }
  0x14   :  { %804 = vmatmul.mubr.msk.bf16.vlgmr.msra.gmra.mxu0 %vm66_vm1, %v47_v8  ;;  %329 = vmatpush1.bf16.msra.mxu1 %v919_v9  ;;  %v938_v22 = vld [vmem:[%s1283_s3 + $0xf4] ss:$8 sps:$4 sm:$0xff]   ;;  %v940_v23 = vld [vmem:[%s1283_s3 + $0xf0] ss:$8 sps:$4 sm:$0xff]   ;;  %v941_v24 = vld [vmem:[%s1283_s3 + $0xe4] ss:$8 sps:$4 sm:$0xff]  }
  0x15   :  { %330 = vmatprep.subr.bf16.mxu1 %v920_v10  ;;  %v943_v25 = vld [vmem:[%s1283_s3 + $0xe0] ss:$8 sps:$4 sm:$0xff]   ;;  %v944_v26 = vld [vmem:[%s1283_s3 + $0xd4] ss:$8 sps:$4 sm:$0xff]   ;;  %v946_v27 = vld [vmem:[%s1283_s3 + $0xd0] ss:$8 sps:$4 sm:$0xff]  }
  0x16   :  { %v947_v28 = vld [vmem:[%s1283_s3 + $0xc4] ss:$8 sps:$4 sm:$0xff]   ;;  %v949_v29 = vld [vmem:[%s1283_s3 + $0xc0] ss:$8 sps:$4 sm:$0xff]   ;;  %v950_v30 = vld [vmem:[%s1283_s3 + $0xb4] ss:$8 sps:$4 sm:$0xff]  }
  0x17   :  { %v952_v31 = vld [vmem:[%s1283_s3 + $0xb0] ss:$8 sps:$4 sm:$0xff]   ;;  %v953_v32 = vld [vmem:[%s1283_s3 + $0xa4] ss:$8 sps:$4 sm:$0xff]   ;;  %v955_v33 = vld [vmem:[%s1283_s3 + $0xa0] ss:$8 sps:$4 sm:$0xff]  }
  0x18   :  { %331 = vmatpush1.bf16.msra.mxu1 %v922_v11  ;;  %v956_v34 = vld [vmem:[%s1283_s3 + $0x94] ss:$8 sps:$4 sm:$0xff]   ;;  %v958_v35 = vld [vmem:[%s1283_s3 + $0x90] ss:$8 sps:$4 sm:$0xff]   ;;  %v959_v36 = vld [vmem:[%s1283_s3 + $0x84] ss:$8 sps:$4 sm:$0xff]  }
  0x19   :  { %332 = vmatprep.subr.bf16.mxu1 %v923_v12  ;;  %v961_v37 = vld [vmem:[%s1283_s3 + $0x80] ss:$8 sps:$4 sm:$0xff]   ;;  %v962_v38 = vld [vmem:[#allocation2 + $0x70] ss:$8 sps:$4 sm:$0xff]   ;;  %v964_v39 = vld [vmem:[#allocation2 + $0x74] ss:$8 sps:$4 sm:$0xff]  }
  0x1a   :  { %v967_v40 = vld [vmem:[#allocation2 + $0x64] ss:$8 sps:$4 sm:$0xff]   ;;  %575 = vmatprep.subr.bf16.mxu0 %v964_v39  ;;  %v965_v41 = vld [vmem:[#allocation2 + $0x60] ss:$8 sps:$4 sm:$0xff]   ;;  %v970_v42 = vld [vmem:[#allocation2 + $0x54] ss:$8 sps:$4 sm:$0xff]  }
  0x1b   :  { %576 = vmatpush1.bf16.msra.mxu0 %v962_v38  ;;  %v968_v43 = vld [vmem:[#allocation2 + $0x50] ss:$8 sps:$4 sm:$0xff]   ;;  %v973_v44 = vld [vmem:[#allocation2 + $0x44] ss:$8 sps:$4 sm:$0xff]   ;;  %v971_v45 = vld [vmem:[#allocation2 + $0x40] ss:$8 sps:$4 sm:$0xff]  }
  0x1c   :  { %333 = vmatpush1.bf16.msra.mxu1 %v925_v13  ;;  %577 = vmatprep.subr.bf16.mxu0 %v967_v40  ;;  %v976_v46 = vld [vmem:[#allocation2 + $0x34] ss:$8 sps:$4 sm:$0xff]   ;;  %v974_v47 = vld [vmem:[#allocation2 + $0x30] ss:$8 sps:$4 sm:$0xff]   ;;  %v979_v48 = vld [vmem:[#allocation2 + $0x24] ss:$8 sps:$4 sm:$0xff]  }
  0x1d   :  { %334 = vmatprep.subr.bf16.mxu1 %v926_v14  ;;  %v977_v49 = vld [vmem:[#allocation2 + $0x20] ss:$8 sps:$4 sm:$0xff]   ;;  %v982_v50 = vld [vmem:[#allocation2 + $0x14] ss:$8 sps:$4 sm:$0xff]   ;;  %v980_v51 = vld [vmem:[#allocation2 + $0x10] ss:$8 sps:$4 sm:$0xff]  }
  0x1e   :  { %v985_v52 = vld [vmem:[#allocation2 + $0x4] ss:$8 sps:$4 sm:$0xff]   ;;  %v983_v53 = vld [vmem:[#allocation2] ss:$8 sps:$4 sm:$0xff]   ;;  %v988_v54 = vld [vmem:[#allocation2 + $0xf4] ss:$8 sps:$4 sm:$0xff]  }
  0x1f   :  { %578 = vmatpush1.bf16.msra.mxu0 %v965_v41  ;;  %v986_v55 = vld [vmem:[#allocation2 + $0xf0] ss:$8 sps:$4 sm:$0xff]   ;;  %v991_v56 = vld [vmem:[#allocation2 + $0xe4] ss:$8 sps:$4 sm:$0xff]   ;;  %v989_v57 = vld [vmem:[#allocation2 + $0xe0] ss:$8 sps:$4 sm:$0xff]  }
  0x20   :  { %335 = vmatpush1.bf16.msra.mxu1 %v928_v15  ;;  %579 = vmatprep.subr.bf16.mxu0 %v970_v42  ;;  %v994_v58 = vld [vmem:[#allocation2 + $0xd4] ss:$8 sps:$4 sm:$0xff]   ;;  %v992_v59 = vld [vmem:[#allocation2 + $0xd0] ss:$8 sps:$4 sm:$0xff]   ;;  %v997_v60 = vld [vmem:[#allocation2 + $0xc4] ss:$8 sps:$4 sm:$0xff]  }
  0x21   :  { %336 = vmatprep.subr.bf16.mxu1 %v929_v16  ;;  %v995_v61 = vld [vmem:[#allocation2 + $0xc0] ss:$8 sps:$4 sm:$0xff]   ;;  %v1000_v62 = vld [vmem:[#allocation2 + $0xb4] ss:$8 sps:$4 sm:$0xff]   ;;  %v998_v63 = vld [vmem:[#allocation2 + $0xb0] ss:$8 sps:$4 sm:$0xff]  }
  0x22   :  { %v1003_v0 = vld [vmem:[#allocation2 + $0xa4] ss:$8 sps:$4 sm:$0xff]   ;;  %v1001_v1 = vld [vmem:[#allocation2 + $0xa0] ss:$8 sps:$4 sm:$0xff]   ;;  %v52_v3 = vshrl.u32 %v51_v2, 7 }
  0x23   :  { %580 = vmatpush1.bf16.msra.mxu0 %v968_v43  ;;  %v49_v5 = vld [vmem:[%s1282_s2] sm:$0x3] }
  0x24   :  { %337 = vmatpush1.bf16.msra.mxu1 %v931_v17  ;;  %581 = vmatprep.subr.bf16.mxu0 %v973_v44  ;;  %v1207_v4 = vsub.s32 0, %v52_v3  ;;  %v1212_v6 = vsub.s32 1, %v52_v3  ;;  %v869_v2 = vld [vmem:[%s1288_s8] ss:$0 sm:$0xff] }
  0x25   :  { %338 = vmatprep.subr.bf16.mxu1 %v932_v18 }
  0x26   :  { %v54_v7 = vrot.slane %v49_v5, %v1207_v4  ;;  %v58_v8 = vrot.slane %v49_v5, %v1212_v6 }
  0x27   :  { %582 = vmatpush1.bf16.msra.mxu0 %v971_v45 }
  0x28   :  { %339 = vmatpush1.bf16.msra.mxu1 %v934_v19  ;;  %583 = vmatprep.subr.bf16.mxu0 %v976_v46  ;;  %v1006_v19 = vld [vmem:[#allocation2 + $0x94] ss:$8 sps:$4 sm:$0xff]  }
  0x29   :  { %340 = vmatprep.subr.bf16.mxu1 %v935_v20  ;;  %v1004_v20 = vld [vmem:[#allocation2 + $0x90] ss:$8 sps:$4 sm:$0xff]  }
  0x2b   :  { %584 = vmatpush1.bf16.msra.mxu0 %v974_v47 }
  0x2c   :  { %341 = vmatpush1.bf16.msra.mxu1 %v937_v21  ;;  %585 = vmatprep.subr.bf16.mxu0 %v979_v48  ;;  %v1009_v21 = vld [vmem:[#allocation2 + $0x84] ss:$8 sps:$4 sm:$0xff]  }
  0x2d   :  { %342 = vmatprep.subr.bf16.mxu1 %v938_v22  ;;  %v1007_v22 = vld [vmem:[#allocation2 + $0x80] ss:$8 sps:$4 sm:$0xff]  }
  0x2e   :  { %v1022_v48 = vld [vmem:[%s1287_s7 + $0x48] sm:$0xff]  }
  0x2f   :  { %586 = vmatpush1.bf16.msra.mxu0 %v977_v49  ;;  %v1023_v49 = vld [vmem:[%s1287_s7 + $0x8] sm:$0xff]  }
  0x30   :  { %343 = vmatpush2.bf16.msra.mxu1 %v940_v23  ;;  %587 = vmatprep.subr.bf16.mxu0 %v982_v50  ;;  %v1010_v23 = vld [vmem:[%s1287_s7 + $0x78] sm:$0xff]   ;;  %v1024_v50 = vld [vmem:[%s1287_s7 + $0x40] sm:$0xff]  }
  0x31   :  { %344 = vmatprep.subr.bf16.mxu1 %v941_v24  ;;  %v1011_v24 = vld [vmem:[%s1287_s7 + $0x38] sm:$0xff]  }
  0x33   :  { %588 = vmatpush1.bf16.msra.mxu0 %v980_v51  ;;  %v1025_v51 = vld [vmem:[%s1287_s7] sm:$0xff]  }
  0x34   :  { %345 = vmatpush2.bf16.msra.mxu1 %v943_v25  ;;  %589 = vmatprep.subr.bf16.mxu0 %v985_v52  ;;  %v1012_v25 = vld [vmem:[%s1287_s7 + $0x70] sm:$0xff]   ;;  %v403_v52 = vld [vmem:[%s1286_s6] sm:$0x3] }
  0x35   :  { %346 = vmatprep.subr.bf16.mxu1 %v944_v26  ;;  %v1013_v26 = vld [vmem:[%s1287_s7 + $0x30] sm:$0xff]  }
  0x37   :  { %590 = vmatpush1.bf16.msra.mxu0 %v983_v53  ;;  %v408_v53 = vrot.slane %v403_v52, %v1207_v4 }
  0x38   :  { %347 = vmatpush2.bf16.msra.mxu1 %v946_v27  ;;  %591 = vmatprep.subr.bf16.mxu0 %v988_v54  ;;  %v1014_v27 = vld [vmem:[%s1287_s7 + $0x68] sm:$0xff]   ;;  %v412_v54 = vrot.slane %v403_v52, %v1212_v6 }
  0x39   :  { %348 = vmatprep.subr.bf16.mxu1 %v947_v28  ;;  %v1015_v28 = vld [vmem:[%s1287_s7 + $0x28] sm:$0xff]  }
  0x3b   :  { %592 = vmatpush2.bf16.msra.mxu0 %v986_v55 }
  0x3c   :  { %349 = vmatpush2.bf16.msra.mxu1 %v949_v29  ;;  %593 = vmatprep.subr.bf16.mxu0 %v991_v56  ;;  %v1016_v29 = vld [vmem:[%s1287_s7 + $0x60] sm:$0xff]  }
  0x3d   :  { %350 = vmatprep.subr.bf16.mxu1 %v950_v30  ;;  %v1017_v30 = vld [vmem:[%s1287_s7 + $0x20] sm:$0xff]  }
  0x3f   :  { %594 = vmatpush2.bf16.msra.mxu0 %v989_v57 }
  0x40   :  { %351 = vmatpush2.bf16.msra.mxu1 %v952_v31  ;;  %595 = vmatprep.subr.bf16.mxu0 %v994_v58  ;;  %v1018_v31 = vld [vmem:[%s1287_s7 + $0x58] sm:$0xff]  }
  0x41   :  { %352 = vmatprep.subr.bf16.mxu1 %v953_v32  ;;  %v1019_v32 = vld [vmem:[%s1287_s7 + $0x18] sm:$0xff]  }
  0x43   :  { %596 = vmatpush2.bf16.msra.mxu0 %v992_v59 }
  0x44   :  { %353 = vmatpush2.bf16.msra.mxu1 %v955_v33  ;;  %597 = vmatprep.subr.bf16.mxu0 %v997_v60  ;;  %v1020_v33 = vld [vmem:[%s1287_s7 + $0x50] sm:$0xff]  }
  0x45   :  { %354 = vmatprep.subr.bf16.mxu1 %v956_v34  ;;  %v1021_v34 = vld [vmem:[%s1287_s7 + $0x10] sm:$0xff]  }
  0x47   :  { %598 = vmatpush2.bf16.msra.mxu0 %v995_v61 }
  0x48   :  { %355 = vmatpush2.bf16.msra.mxu1 %v958_v35  ;;  %599 = vmatprep.subr.bf16.mxu0 %v1000_v62  ;;  %v154_v35 = vld [vmem:[%s1284_s4] sm:$0x3] }
  0x49   :  { %356 = vmatprep.subr.bf16.mxu1 %v959_v36  ;;  %v159_v36 = vrot.slane %v154_v35, %v1207_v4 }
  0x4b   :  { %600 = vmatpush2.bf16.msra.mxu0 %v998_v63 }
  0x4c   :  { %357 = vmatpush2.bf16.msra.mxu1 %v961_v37  ;;  %601 = vmatprep.subr.bf16.mxu0 %v1003_v0  ;;  %v163_v37 = vrot.slane %v154_v35, %v1212_v6 }
  0x4d   :  { %886 = vmatprep.subr.bf16.mxu1 %v1010_v23 }
  0x4f   :  { %602 = vmatpush2.bf16.msra.mxu0 %v1001_v1 }
  0x50   :  { %603 = vmatprep.subr.bf16.mxu0 %v1006_v19 }
  0x53   :  { %604 = vmatpush2.bf16.msra.mxu0 %v1004_v20 }
  0x54   :  { %605 = vmatprep.subr.bf16.mxu0 %v1009_v21 }
  0x57   :  { %606 = vmatpush2.bf16.msra.mxu0 %v1007_v22 }
  0xd4   :  { %v111_v9 = vpop.f32.mrf.mxu0 }
  0xd5   :  { %v112_v10 = vadd.f32 %v111_v9, %v54_v7 }
  0xd6   :  { %v113_v11 = vpop.f32.mrf.mxu0 }
  0xd7   :  { %v114_v12 = vadd.f32 %v113_v11, %v58_v8  ;;  %v118_v13 = vmax.f32 %v112_v10, 0.0 }
  0xd8   :  { %v115_v14 = vpop.f32.mrf.mxu0 }
  0xd9   :  { %v119_v15 = vmax.f32 %v114_v12, 0.0  ;;  %v120_v18 = vpack.c.bf16 %v118_v13, %v118_v13 }
  0xda   :  { %v116_v16 = vpop.f32.mrf.mxu0 }
  0xdb   :  { %v121_v17 = vpack.c.bf16 %v119_v15, %v119_v15 }
  0xdd   :  { %358 = vmatprep.mubr.bf16.mxu1 %v121_v17 }
  0xde   :  { %359 = vmatmul.mubr.bf16.vlgmr.msra.gmra.mxu1 %v120_v18 }
  0xdf   :  { %887 = vmatpush3.bf16.msra.mxu1 %v1011_v24 }
  0xe0   :  { %888 = vmatprep.subr.bf16.mxu1 %v1012_v25 }
  0xe3   :  { %889 = vmatpush3.bf16.msra.mxu1 %v1013_v26 }
  0xe4   :  { %890 = vmatprep.subr.bf16.mxu1 %v1014_v27 }
  0xe7   :  { %891 = vmatpush3.bf16.msra.mxu1 %v1015_v28 }
  0xe8   :  { %892 = vmatprep.subr.bf16.mxu1 %v1016_v29 }
  0xeb   :  { %893 = vmatpush3.bf16.msra.mxu1 %v1017_v30 }
  0xec   :  { %894 = vmatprep.subr.bf16.mxu1 %v1018_v31 }
  0xef   :  { %895 = vmatpush3.bf16.msra.mxu1 %v1019_v32 }
  0xf0   :  { %896 = vmatprep.subr.bf16.mxu1 %v1020_v33 }
  0xf3   :  { %897 = vmatpush3.bf16.msra.mxu1 %v1021_v34 }
  0xf4   :  { %898 = vmatprep.subr.bf16.mxu1 %v1022_v48 }
  0xf7   :  { %899 = vmatpush3.bf16.msra.mxu1 %v1023_v49 }
  0xf8   :  { %900 = vmatprep.subr.bf16.mxu1 %v1024_v50 }
  0xfb   :  { %901 = vmatpush3.bf16.msra.mxu1 %v1025_v51 }
 0x19e   :  { %v360_v38 = vpop.f32.mrf.mxu1 }
 0x19f   :  { %v361_v39 = vadd.f32 %v360_v38, %v159_v36 }
 0x1a0   :  { %v362_v40 = vpop.f32.mrf.mxu1 }
 0x1a1   :  { %v363_v41 = vadd.f32 %v362_v40, %v163_v37  ;;  %v367_v42 = vmax.f32 %v361_v39, 0.0 }
 0x1a2   :  { %v364_v43 = vpop.f32.mrf.mxu1 }
 0x1a3   :  { %v368_v44 = vmax.f32 %v363_v41, 0.0  ;;  %v369_v47 = vpack.c.bf16 %v367_v42, %v367_v42 }
 0x1a4   :  { %v365_v45 = vpop.f32.mrf.mxu1 }
 0x1a5   :  { %v370_v46 = vpack.c.bf16 %v368_v44, %v368_v44 }
 0x1a7   :  { %607 = vmatprep.mubr.bf16.mxu0 %v370_v46 }
 0x1a8   :  { %608 = vmatmul.mubr.bf16.vlgmr.msra.gmra.mxu0 %v369_v47 }
 0x268   :  { %v609_v55 = vpop.f32.mrf.mxu0 }
 0x269   :  { %v610_v56 = vadd.f32 %v609_v55, %v408_v53 }
 0x26a   :  { %v611_v57 = vpop.f32.mrf.mxu0 }
 0x26b   :  { %v612_v58 = vadd.f32 %v611_v57, %v412_v54  ;;  %v616_v59 = vmax.f32 %v610_v56, 0.0 }
 0x26c   :  { %v613_v60 = vpop.f32.mrf.mxu0 }
 0x26d   :  { %v617_v61 = vmax.f32 %v612_v58, 0.0  ;;  %v618_v0 = vpack.c.bf16 %v616_v59, %v616_v59 }
 0x26e   :  { %v614_v62 = vpop.f32.mrf.mxu0 }
 0x26f   :  { %v619_v63 = vpack.c.bf16 %v617_v61, %v617_v61 }
 0x271   :  { %787 = vmatprep.mubr.bf16.mxu1 %v619_v63 }
 0x272   :  { %788 = vmatmul.mubr.bf16.vlgmr.msra.gmra.mxu1 %v618_v0 }
 0x332   :  { %v902_v1 = vpop.f32.mrf.mxu1 }
 0x334   :  { %v903_v3 = vpop.f32.mrf.mxu1 }
 0x335   :  { %v904_v4 = vadd.f32 %v903_v3, %v902_v1 }
 0x336   :  { %v905_v5 = vpop.f32.mrf.mxu1 }
 0x337   :  { %v790_v6 = vadd.f32 %v904_v4, %v869_v2 }
 0x338   :  { %v906_v7 = vpop.f32.mrf.mxu1 }
 0x339   :  { %795 = vst [vmem:[%s1289_s9] sm:$0xff] %v790_v6 }
 0x33a   :  { %800 = vsyncpa [#allocation3], 1 }

</bundles_post_ra>
